<compile_context>
chip_gen: v7x
topology: tpu7x:2x2x1
jax: 0.10.0
libtpu: 0.0.40
codegen_flags: <defaults>
</compile_context>

<pallas_src>
import math

import jax
import jax.numpy as jnp
from jax.experimental import pallas as pl
from jax.experimental.pallas import tpu as pltpu

D = 128            # hidden size
F = 256            # MLP hidden size
V = 256            # vocab size
S_MAX = 16         # padded max sequence length (>= 8 rows for tiling)
EOS_ID = 0
MAX_NEW_TOKENS = 4
NEG_INF = -1e30    # must stay f32 (not representable in bf16)
SCALE = 1.0 / math.sqrt(D)


# ---------------------------------------------------------------------------
# One fused kernel.  Step 0 additionally prefills the KV cache from the whole
# padded prompt; every step (including step 0) then runs a single-row decode:
# fused QKV -> cache update -> attention over the cache -> MLP -> LM head ->
# greedy token + probability -> next-token embedding for the following step.
# Cross-step state (KV cache, next-token embedding) lives in VMEM scratch;
# the prompt length arrives via scalar prefetch (SMEM).
# ---------------------------------------------------------------------------
def decode_kernel(len_ref,                                     # scalar prefetch
                  xp_ref, emb_ref, wqkv_ref, wo_ref,
                  w1_ref, w2_ref, wh_ref,                      # resident inputs
                  tok_ref, prob_ref,                           # outputs
                  kc_ref, vc_ref, xnext_ref):                  # persistent scratch
    s = pl.program_id(0)
    L = len_ref[0]
    pos = L - 1 + s            # sequence position of the token processed now

    # ---- step 0 only: prefill K/V cache, pick the last valid prompt row ----
    @pl.when(s == 0)
    def _prefill():
        x = xp_ref[...]                                        # (S_MAX, D) bf16
        qkv = jnp.dot(x, wqkv_ref[...],
                      preferred_element_type=jnp.float32)      # (S_MAX, 3D) f32
        kc_ref[...] = qkv[:, D:2 * D]
        vc_ref[...] = qkv[:, 2 * D:3 * D]
        # select row L-1 without host-side dynamic_slice
        rid = jax.lax.broadcasted_iota(jnp.int32, (S_MAX, 1), 0)
        sel = (rid == (L - 1)).astype(jnp.float32)
        x_last = jnp.sum(x.astype(jnp.float32) * sel, axis=0, keepdims=True)
        xnext_ref[...] = x_last.astype(jnp.bfloat16)           # (1, D)

    # ---- every step: single-row transformer block + head -------------------
    x = xnext_ref[...]                                         # (1, D) bf16
    qkv = jnp.dot(x, wqkv_ref[...],
                  preferred_element_type=jnp.float32)          # (1, 3D) f32
    q = qkv[:, 0:D]
    # at s == 0 this rewrites row L-1 with identical values (harmless)
    kc_ref[pl.ds(pos, 1), :] = qkv[:, D:2 * D]
    vc_ref[pl.ds(pos, 1), :] = qkv[:, 2 * D:3 * D]

    kc = kc_ref[...].astype(jnp.bfloat16)                      # (S_MAX, D)
    vc = vc_ref[...].astype(jnp.bfloat16)
    scores = jnp.dot(q.astype(jnp.bfloat16), kc.T,
                     preferred_element_type=jnp.float32) * SCALE   # (1, S_MAX)
    col = jax.lax.broadcasted_iota(jnp.int32, (1, S_MAX), 1)
    scores = jnp.where(col <= pos, scores, NEG_INF)            # causal + pad mask
    m = jnp.max(scores, axis=-1, keepdims=True)
    p = jnp.exp(scores - m)
    p = p * pl.reciprocal(jnp.sum(p, axis=-1, keepdims=True), approx=True)
    attn = jnp.dot(p.astype(jnp.bfloat16), vc,
                   preferred_element_type=jnp.float32)         # (1, D)
    h = x.astype(jnp.float32) + jnp.dot(
        attn.astype(jnp.bfloat16), wo_ref[...],
        preferred_element_type=jnp.float32)
    mlp = jnp.maximum(
        jnp.dot(h.astype(jnp.bfloat16), w1_ref[...],
                preferred_element_type=jnp.float32), 0.0)
    h = h + jnp.dot(mlp.astype(jnp.bfloat16), w2_ref[...],
                    preferred_element_type=jnp.float32)

    # LM head -> greedy token id, its exact softmax prob, next-step embedding
    logits = jnp.dot(h.astype(jnp.bfloat16), wh_ref[...],
                     preferred_element_type=jnp.float32)       # (1, V) f32
    mx = jnp.max(logits, axis=-1, keepdims=True)
    denom = jnp.sum(jnp.exp(logits - mx), axis=-1, keepdims=True)
    prob = 1.0 / denom                # exact prob of the argmax token (<= 1)
    lane = jax.lax.broadcasted_iota(jnp.int32, (1, V), 1)
    tok_f = jnp.min(jnp.where(logits == mx, lane.astype(jnp.float32),
                              jnp.float32(V)),
                    axis=-1, keepdims=True)                    # first argmax
    tok = tok_f.astype(jnp.int32)                              # (1, 1) int32
    onehot = (lane == tok).astype(jnp.bfloat16)                # (1, V)
    xnext_ref[...] = jnp.dot(onehot, emb_ref[...],
                             preferred_element_type=jnp.float32
                             ).astype(jnp.bfloat16)            # next-step input
    tok_ref[pl.ds(s, 1), :] = tok
    prob_ref[pl.ds(s, 1), :] = prob


def _resident(shape):
    # Same block every step -> stays in VMEM for the whole decode.
    return pl.BlockSpec(shape, lambda s, L: tuple(0 for _ in shape))


decode_call = pl.pallas_call(
    decode_kernel,
    out_shape=(jax.ShapeDtypeStruct((MAX_NEW_TOKENS, 1), jnp.int32),
               jax.ShapeDtypeStruct((MAX_NEW_TOKENS, 1), jnp.float32)),
    grid_spec=pltpu.PrefetchScalarGridSpec(
        num_scalar_prefetch=1,                 # prompt length -> SMEM
        grid=(MAX_NEW_TOKENS,),                # on-device decode loop
        in_specs=[_resident((S_MAX, D)),       # embedded padded prompt
                  _resident((V, D)),           # embedding table
                  _resident((D, 3 * D)),       # fused Wq|Wk|Wv
                  _resident((D, D)),           # Wo
                  _resident((D, F)),           # W1
                  _resident((F, D)),           # W2
                  _resident((D, V))],          # LM head
        out_specs=(_resident((MAX_NEW_TOKENS, 1)),
                   _resident((MAX_NEW_TOKENS, 1))),
        scratch_shapes=[pltpu.VMEM((S_MAX, D), jnp.float32),   # K cache
                        pltpu.VMEM((S_MAX, D), jnp.float32),   # V cache
                        pltpu.VMEM((1, D), jnp.bfloat16)],     # next-token embed
    ),
    compiler_params=pltpu.CompilerParams(
        dimension_semantics=("arbitrary",)),   # steps are sequential
)


def init_params(key):
    ks = jax.random.split(key, 6)
    s = 0.02
    def w(k, shape):
        return (jax.random.normal(k, shape, jnp.float32) * s).astype(jnp.bfloat16)
    return {
        "emb":    w(ks[0], (V, D)),
        "wqkv":   w(ks[1], (D, 3 * D)),
        "wo":     w(ks[2], (D, D)),
        "w1":     w(ks[3], (D, F)),
        "w2":     w(ks[4], (F, D)),
        "w_head": w(ks[5], (D, V)),
    }


@jax.jit
def run_decode(params, padded_ids, length):
    # Embedding lookup of the prompt is tokenizer-adjacent glue; one XLA gather.
    x_prompt = jnp.take(params["emb"], padded_ids, axis=0)    # (S_MAX, D) bf16
    toks, probs = decode_call(length, x_prompt,
                              params["emb"], params["wqkv"], params["wo"],
                              params["w1"], params["w2"], params["w_head"])
    return toks, probs


def generate(params, prompt_ids, max_new_tokens=MAX_NEW_TOKENS):
    """Greedy decode (temperature=0, do_sample=False) with transition probs."""
    L = len(prompt_ids)
    assert 1 <= L and L + MAX_NEW_TOKENS - 1 <= S_MAX
    padded = jnp.zeros((S_MAX,), jnp.int32).at[:L].set(
        jnp.asarray(prompt_ids, jnp.int32))
    length = jnp.asarray([L], jnp.int32)
    toks, probs = jax.block_until_ready(run_decode(params, padded, length))
    toks = [int(t) for t in toks[:, 0]]
    probs = [float(p) for p in probs[:, 0]]

    ids = list(prompt_ids)
    gen_tokens, gen_probs = [], []
    n = min(max_new_tokens, MAX_NEW_TOKENS)
    for t, p in zip(toks[:n], probs[:n]):
        ids.append(t)
        gen_tokens.append(t)
        gen_probs.append(p)
        if t == EOS_ID:   # TODO(synk): string stop-token matching stays glue
            break
    return ids, gen_tokens, gen_probs


if __name__ == "__main__":
    key = jax.random.PRNGKey(0)
    params = init_params(key)

    # deterministic synthetic "prompt" of 8 token ids (stands in for tokenizer)
    prompt_ids = [int(t) for t in
                  jax.random.randint(jax.random.PRNGKey(1), (8,), 1, V)]

    full_ids, new_tokens, transition_scores = generate(params, prompt_ids)

    # sanity: probabilities are valid softmax outputs, at least one token emitted
    assert all(0.0 <= p <= 1.0 for p in transition_scores)
    assert len(new_tokens) >= 1
    assert len(full_ids) == len(prompt_ids) + len(new_tokens)

    print("KERNEL_OK")
</pallas_src>

<mosaic_0001>
module attributes {stable_mosaic.version = 11 : i64} {
  func.func @decode_kernel(%arg0: i32, %arg1: memref<1xi32, #tpu.memory_space<smem>>, %arg2: memref<16x128xbf16, #tpu.memory_space<vmem>>, %arg3: memref<256x128xbf16, #tpu.memory_space<vmem>>, %arg4: memref<128x384xbf16, #tpu.memory_space<vmem>>, %arg5: memref<128x128xbf16, #tpu.memory_space<vmem>>, %arg6: memref<128x256xbf16, #tpu.memory_space<vmem>>, %arg7: memref<256x128xbf16, #tpu.memory_space<vmem>>, %arg8: memref<128x256xbf16, #tpu.memory_space<vmem>>, %arg9: memref<4x1xi32, #tpu.memory_space<vmem>>, %arg10: memref<4x1xf32, #tpu.memory_space<vmem>>, %arg11: memref<16x128xf32, #tpu.memory_space<vmem>>, %arg12: memref<16x128xf32, #tpu.memory_space<vmem>>, %arg13: memref<1x128xbf16, #tpu.memory_space<vmem>>) attributes {dimension_semantics = [#tpu.dimension_semantics<arbitrary>], iteration_bounds = array<i64: 4>, scalar_prefetch = 1 : i64, scratch_operands = 3 : i64, tpu.core_type = #tpu.core_type<tc>, window_params = [{pipeline_mode = #tpu.pipeline_mode<synchronous>, transform_indices = @transform_0, window_bounds = array<i64: 16, 128>}, {pipeline_mode = #tpu.pipeline_mode<synchronous>, transform_indices = @transform_1, window_bounds = array<i64: 256, 128>}, {pipeline_mode = #tpu.pipeline_mode<synchronous>, transform_indices = @transform_2, window_bounds = array<i64: 128, 384>}, {pipeline_mode = #tpu.pipeline_mode<synchronous>, transform_indices = @transform_3, window_bounds = array<i64: 128, 128>}, {pipeline_mode = #tpu.pipeline_mode<synchronous>, transform_indices = @transform_4, window_bounds = array<i64: 128, 256>}, {pipeline_mode = #tpu.pipeline_mode<synchronous>, transform_indices = @transform_5, window_bounds = array<i64: 256, 128>}, {pipeline_mode = #tpu.pipeline_mode<synchronous>, transform_indices = @transform_6, window_bounds = array<i64: 128, 256>}, {pipeline_mode = #tpu.pipeline_mode<synchronous>, transform_indices = @transform_7, window_bounds = array<i64: 4, 1>}, {pipeline_mode = #tpu.pipeline_mode<synchronous>, transform_indices = @transform_8, window_bounds = array<i64: 4, 1>}]} {
    %c0 = arith.constant 0 : index
    %0 = memref.load %arg1[%c0] : memref<1xi32, #tpu.memory_space<smem>>
    %c1_i32 = arith.constant 1 : i32
    %1 = arith.subi %0, %c1_i32 : i32
    %2 = arith.addi %1, %arg0 : i32
    %c0_i32 = arith.constant 0 : i32
    %3 = arith.cmpi eq, %arg0, %c0_i32 : i32
    %4 = arith.extui %3 : i1 to i32
    %c0_i32_0 = arith.constant 0 : i32
    %5 = arith.cmpi ne, %4, %c0_i32_0 : i32
    scf.if %5 {
      %c0_42 = arith.constant 0 : index
      %c0_43 = arith.constant 0 : index
      %90 = vector.load %arg2[%c0_42, %c0_43] : memref<16x128xbf16, #tpu.memory_space<vmem>>, vector<16x128xbf16>
      %c0_44 = arith.constant 0 : index
      %c0_45 = arith.constant 0 : index
      %91 = vector.load %arg4[%c0_44, %c0_45] : memref<128x384xbf16, #tpu.memory_space<vmem>>, vector<128x384xbf16>
      %cst_46 = arith.constant dense<0.000000e+00> : vector<16x384xf32>
      %92 = tpu.matmul %90, %91, %cst_46 {dimension_numbers = #tpu.dot_dimension_numbers<[1], [0], [0], [1], [0, 0, 1, 1], [], []>} : vector<16x128xbf16>, vector<128x384xbf16>, vector<16x384xf32> -> vector<16x384xf32>
      %93 = vector.extract_strided_slice %92 {offsets = [0, 128], sizes = [16, 128], strides = [1, 1]} : vector<16x384xf32> to vector<16x128xf32>
      %c0_47 = arith.constant 0 : index
      %c0_48 = arith.constant 0 : index
      %94 = vector.load %arg11[%c0_47, %c0_48] : memref<16x128xf32, #tpu.memory_space<vmem>>, vector<16x128xf32>
      tpu.vector_store %arg11[%c0_47, %c0_48], %93 {strides = array<i32>} : memref<16x128xf32, #tpu.memory_space<vmem>>, vector<16x128xf32>,
      %95 = vector.extract_strided_slice %92 {offsets = [0, 256], sizes = [16, 128], strides = [1, 1]} : vector<16x384xf32> to vector<16x128xf32>
      %c0_49 = arith.constant 0 : index
      %c0_50 = arith.constant 0 : index
      %96 = vector.load %arg12[%c0_49, %c0_50] : memref<16x128xf32, #tpu.memory_space<vmem>>, vector<16x128xf32>
      tpu.vector_store %arg12[%c0_49, %c0_50], %95 {strides = array<i32>} : memref<16x128xf32, #tpu.memory_space<vmem>>, vector<16x128xf32>,
      %97 = tpu.iota {dimensions = array<i32: 0>} : vector<16x1xi32>
      %c1_i32_51 = arith.constant 1 : i32
      %98 = arith.subi %0, %c1_i32_51 : i32
      %99 = vector.broadcast %98 : i32 to vector<16x1xi32>
      %100 = arith.cmpi eq, %97, %99 : vector<16x1xi32>
      %101 = arith.extui %100 : vector<16x1xi1> to vector<16x1xi32>
      %102 = arith.sitofp %101 : vector<16x1xi32> to vector<16x1xf32>
      %103 = arith.extf %90 : vector<16x128xbf16> to vector<16x128xf32>
      %104 = vector.broadcast %102 : vector<16x1xf32> to vector<16x128xf32>
      %105 = arith.mulf %103, %104 : vector<16x128xf32>
      %cst_52 = arith.constant dense<0.000000e+00> : vector<128xf32>
      %106 = vector.multi_reduction <add>, %105, %cst_52 [0] : vector<16x128xf32> to vector<128xf32>
      %107 = vector.shape_cast %106 : vector<128xf32> to vector<1x128xf32>
      %108 = arith.truncf %107 : vector<1x128xf32> to vector<1x128xbf16>
      %c0_53 = arith.constant 0 : index
      %c0_54 = arith.constant 0 : index
      %109 = vector.load %arg13[%c0_53, %c0_54] : memref<1x128xbf16, #tpu.memory_space<vmem>>, vector<1x128xbf16>
      tpu.vector_store %arg13[%c0_53, %c0_54], %108 {strides = array<i32>} : memref<1x128xbf16, #tpu.memory_space<vmem>>, vector<1x128xbf16>,
    } else {
    }
    %c0_1 = arith.constant 0 : index
    %c0_2 = arith.constant 0 : index
    %6 = vector.load %arg13[%c0_1, %c0_2] : memref<1x128xbf16, #tpu.memory_space<vmem>>, vector<1x128xbf16>
    %c0_3 = arith.constant 0 : index
    %c0_4 = arith.constant 0 : index
    %7 = vector.load %arg4[%c0_3, %c0_4] : memref<128x384xbf16, #tpu.memory_space<vmem>>, vector<128x384xbf16>
    %cst = arith.constant dense<0.000000e+00> : vector<1x384xf32>
    %8 = tpu.matmul %6, %7, %cst {dimension_numbers = #tpu.dot_dimension_numbers<[1], [0], [0], [1], [0, 0, 1, 1], [], []>} : vector<1x128xbf16>, vector<128x384xbf16>, vector<1x384xf32> -> vector<1x384xf32>
    %9 = vector.extract_strided_slice %8 {offsets = [0, 0], sizes = [1, 128], strides = [1, 1]} : vector<1x384xf32> to vector<1x128xf32>
    %10 = vector.extract_strided_slice %8 {offsets = [0, 128], sizes = [1, 128], strides = [1, 1]} : vector<1x384xf32> to vector<1x128xf32>
    %11 = arith.index_cast %2 : i32 to index
    %c0_5 = arith.constant 0 : index
    %12 = vector.load %arg11[%11, %c0_5] : memref<16x128xf32, #tpu.memory_space<vmem>>, vector<1x128xf32>
    tpu.vector_store %arg11[%11, %c0_5], %10 {strides = array<i32>} : memref<16x128xf32, #tpu.memory_space<vmem>>, vector<1x128xf32>,
    %13 = vector.extract_strided_slice %8 {offsets = [0, 256], sizes = [1, 128], strides = [1, 1]} : vector<1x384xf32> to vector<1x128xf32>
    %14 = arith.index_cast %2 : i32 to index
    %c0_6 = arith.constant 0 : index
    %15 = vector.load %arg12[%14, %c0_6] : memref<16x128xf32, #tpu.memory_space<vmem>>, vector<1x128xf32>
    tpu.vector_store %arg12[%14, %c0_6], %13 {strides = array<i32>} : memref<16x128xf32, #tpu.memory_space<vmem>>, vector<1x128xf32>,
    %c0_7 = arith.constant 0 : index
    %c0_8 = arith.constant 0 : index
    %16 = vector.load %arg11[%c0_7, %c0_8] : memref<16x128xf32, #tpu.memory_space<vmem>>, vector<16x128xf32>
    %17 = arith.truncf %16 : vector<16x128xf32> to vector<16x128xbf16>
    %c0_9 = arith.constant 0 : index
    %c0_10 = arith.constant 0 : index
    %18 = vector.load %arg12[%c0_9, %c0_10] : memref<16x128xf32, #tpu.memory_space<vmem>>, vector<16x128xf32>
    %19 = arith.truncf %18 : vector<16x128xf32> to vector<16x128xbf16>
    %20 = arith.truncf %9 : vector<1x128xf32> to vector<1x128xbf16>
    %21 = tpu.transpose %17, [1, 0] : vector<16x128xbf16> -> vector<128x16xbf16>
    %cst_11 = arith.constant dense<0.000000e+00> : vector<1x16xf32>
    %22 = tpu.matmul %20, %21, %cst_11 {dimension_numbers = #tpu.dot_dimension_numbers<[1], [0], [0], [1], [0, 0, 1, 1], [], []>} : vector<1x128xbf16>, vector<128x16xbf16>, vector<1x16xf32> -> vector<1x16xf32>
    %cst_12 = arith.constant 0.0883883461 : f32
    %23 = vector.broadcast %cst_12 : f32 to vector<1x16xf32>
    %24 = arith.mulf %22, %23 : vector<1x16xf32>
    %25 = tpu.iota {dimensions = array<i32: 1>} : vector<1x16xi32>
    %26 = vector.broadcast %2 : i32 to vector<1x16xi32>
    %27 = arith.cmpi sle, %25, %26 : vector<1x16xi32>
    %cst_13 = arith.constant -1.000000e+30 : f32
    %28 = vector.broadcast %cst_13 : f32 to vector<1x16xf32>
    %29 = arith.select %27, %24, %28 : vector<1x16xi1>, vector<1x16xf32>
    %cst_14 = arith.constant dense<0xFF800000> : vector<1xf32>
    %30 = vector.multi_reduction <maximumf>, %29, %cst_14 [1] : vector<1x16xf32> to vector<1xf32>
    %31 = vector.shape_cast %30 : vector<1xf32> to vector<1x1xf32>
    %32 = vector.broadcast %31 : vector<1x1xf32> to vector<1x16xf32>
    %33 = arith.subf %29, %32 : vector<1x16xf32>
    %34 = math.exp %33 : vector<1x16xf32>
    %cst_15 = arith.constant dense<0.000000e+00> : vector<1xf32>
    %35 = vector.multi_reduction <add>, %34, %cst_15 [1] : vector<1x16xf32> to vector<1xf32>
    %36 = vector.shape_cast %35 : vector<1xf32> to vector<1x1xf32>
    %37 = tpu.reciprocal %36 {approx = true} : vector<1x1xf32> -> vector<1x1xf32>
    %38 = vector.broadcast %37 : vector<1x1xf32> to vector<1x16xf32>
    %39 = arith.mulf %34, %38 : vector<1x16xf32>
    %40 = arith.truncf %39 : vector<1x16xf32> to vector<1x16xbf16>
    %cst_16 = arith.constant dense<0.000000e+00> : vector<1x128xf32>
    %41 = tpu.matmul %40, %19, %cst_16 {dimension_numbers = #tpu.dot_dimension_numbers<[1], [0], [0], [1], [0, 0, 1, 1], [], []>} : vector<1x16xbf16>, vector<16x128xbf16>, vector<1x128xf32> -> vector<1x128xf32>
    %42 = arith.extf %6 : vector<1x128xbf16> to vector<1x128xf32>
    %43 = arith.truncf %41 : vector<1x128xf32> to vector<1x128xbf16>
    %c0_17 = arith.constant 0 : index
    %c0_18 = arith.constant 0 : index
    %44 = vector.load %arg5[%c0_17, %c0_18] : memref<128x128xbf16, #tpu.memory_space<vmem>>, vector<128x128xbf16>
    %cst_19 = arith.constant dense<0.000000e+00> : vector<1x128xf32>
    %45 = tpu.matmul %43, %44, %cst_19 {dimension_numbers = #tpu.dot_dimension_numbers<[1], [0], [0], [1], [0, 0, 1, 1], [], []>} : vector<1x128xbf16>, vector<128x128xbf16>, vector<1x128xf32> -> vector<1x128xf32>
    %46 = arith.addf %42, %45 : vector<1x128xf32>
    %47 = arith.truncf %46 : vector<1x128xf32> to vector<1x128xbf16>
    %c0_20 = arith.constant 0 : index
    %c0_21 = arith.constant 0 : index
    %48 = vector.load %arg6[%c0_20, %c0_21] : memref<128x256xbf16, #tpu.memory_space<vmem>>, vector<128x256xbf16>
    %cst_22 = arith.constant dense<0.000000e+00> : vector<1x256xf32>
    %49 = tpu.matmul %47, %48, %cst_22 {dimension_numbers = #tpu.dot_dimension_numbers<[1], [0], [0], [1], [0, 0, 1, 1], [], []>} : vector<1x128xbf16>, vector<128x256xbf16>, vector<1x256xf32> -> vector<1x256xf32>
    %cst_23 = arith.constant 0.000000e+00 : f32
    %50 = vector.broadcast %cst_23 : f32 to vector<1x256xf32>
    %51 = arith.maximumf %49, %50 : vector<1x256xf32>
    %52 = arith.truncf %51 : vector<1x256xf32> to vector<1x256xbf16>
    %c0_24 = arith.constant 0 : index
    %c0_25 = arith.constant 0 : index
    %53 = vector.load %arg7[%c0_24, %c0_25] : memref<256x128xbf16, #tpu.memory_space<vmem>>, vector<256x128xbf16>
    %cst_26 = arith.constant dense<0.000000e+00> : vector<1x128xf32>
    %54 = tpu.matmul %52, %53, %cst_26 {dimension_numbers = #tpu.dot_dimension_numbers<[1], [0], [0], [1], [0, 0, 1, 1], [], []>} : vector<1x256xbf16>, vector<256x128xbf16>, vector<1x128xf32> -> vector<1x128xf32>
    %55 = arith.addf %46, %54 : vector<1x128xf32>
    %56 = arith.truncf %55 : vector<1x128xf32> to vector<1x128xbf16>
    %c0_27 = arith.constant 0 : index
    %c0_28 = arith.constant 0 : index
    %57 = vector.load %arg8[%c0_27, %c0_28] : memref<128x256xbf16, #tpu.memory_space<vmem>>, vector<128x256xbf16>
    %cst_29 = arith.constant dense<0.000000e+00> : vector<1x256xf32>
    %58 = tpu.matmul %56, %57, %cst_29 {dimension_numbers = #tpu.dot_dimension_numbers<[1], [0], [0], [1], [0, 0, 1, 1], [], []>} : vector<1x128xbf16>, vector<128x256xbf16>, vector<1x256xf32> -> vector<1x256xf32>
    %cst_30 = arith.constant dense<0xFF800000> : vector<1xf32>
    %59 = vector.multi_reduction <maximumf>, %58, %cst_30 [1] : vector<1x256xf32> to vector<1xf32>
    %60 = vector.shape_cast %59 : vector<1xf32> to vector<1x1xf32>
    %61 = vector.broadcast %60 : vector<1x1xf32> to vector<1x256xf32>
    %62 = arith.subf %58, %61 : vector<1x256xf32>
    %63 = math.exp %62 : vector<1x256xf32>
    %cst_31 = arith.constant dense<0.000000e+00> : vector<1xf32>
    %64 = vector.multi_reduction <add>, %63, %cst_31 [1] : vector<1x256xf32> to vector<1xf32>
    %65 = vector.shape_cast %64 : vector<1xf32> to vector<1x1xf32>
    %cst_32 = arith.constant 1.000000e+00 : f32
    %66 = vector.broadcast %cst_32 : f32 to vector<1x1xf32>
    %67 = arith.divf %66, %65 : vector<1x1xf32>
    %68 = tpu.iota {dimensions = array<i32: 1>} : vector<1x256xi32>
    %69 = vector.broadcast %60 : vector<1x1xf32> to vector<1x256xf32>
    %70 = arith.cmpf oeq, %58, %69 : vector<1x256xf32>
    %71 = arith.sitofp %68 : vector<1x256xi32> to vector<1x256xf32>
    %cst_33 = arith.constant 2.560000e+02 : f32
    %72 = vector.broadcast %cst_33 : f32 to vector<1x256xf32>
    %73 = arith.select %70, %71, %72 : vector<1x256xi1>, vector<1x256xf32>
    %cst_34 = arith.constant dense<0x7F800000> : vector<1xf32>
    %74 = vector.multi_reduction <minimumf>, %73, %cst_34 [1] : vector<1x256xf32> to vector<1xf32>
    %75 = vector.shape_cast %74 : vector<1xf32> to vector<1x1xf32>
    %76 = arith.fptosi %75 : vector<1x1xf32> to vector<1x1xi32>
    %77 = vector.broadcast %76 : vector<1x1xi32> to vector<1x256xi32>
    %78 = arith.cmpi eq, %68, %77 : vector<1x256xi32>
    %79 = arith.extui %78 : vector<1x256xi1> to vector<1x256xi32>
    %80 = arith.sitofp %79 : vector<1x256xi32> to vector<1x256xf32>
    %81 = arith.truncf %80 : vector<1x256xf32> to vector<1x256xbf16>
    %c0_35 = arith.constant 0 : index
    %c0_36 = arith.constant 0 : index
    %82 = vector.load %arg3[%c0_35, %c0_36] : memref<256x128xbf16, #tpu.memory_space<vmem>>, vector<256x128xbf16>
    %cst_37 = arith.constant dense<0.000000e+00> : vector<1x128xf32>
    %83 = tpu.matmul %81, %82, %cst_37 {dimension_numbers = #tpu.dot_dimension_numbers<[1], [0], [0], [1], [0, 0, 1, 1], [], []>} : vector<1x256xbf16>, vector<256x128xbf16>, vector<1x128xf32> -> vector<1x128xf32>
    %84 = arith.truncf %83 : vector<1x128xf32> to vector<1x128xbf16>
    %c0_38 = arith.constant 0 : index
    %c0_39 = arith.constant 0 : index
    %85 = vector.load %arg13[%c0_38, %c0_39] : memref<1x128xbf16, #tpu.memory_space<vmem>>, vector<1x128xbf16>
    tpu.vector_store %arg13[%c0_38, %c0_39], %84 {strides = array<i32>} : memref<1x128xbf16, #tpu.memory_space<vmem>>, vector<1x128xbf16>,
    %86 = arith.index_cast %arg0 : i32 to index
    %c0_40 = arith.constant 0 : index
    %87 = vector.load %arg9[%86, %c0_40] : memref<4x1xi32, #tpu.memory_space<vmem>>, vector<1x1xi32>
    tpu.vector_store %arg9[%86, %c0_40], %76 {strides = array<i32>} : memref<4x1xi32, #tpu.memory_space<vmem>>, vector<1x1xi32>,
    %88 = arith.index_cast %arg0 : i32 to index
    %c0_41 = arith.constant 0 : index
    %89 = vector.load %arg10[%88, %c0_41] : memref<4x1xf32, #tpu.memory_space<vmem>>, vector<1x1xf32>
    tpu.vector_store %arg10[%88, %c0_41], %67 {strides = array<i32>} : memref<4x1xf32, #tpu.memory_space<vmem>>, vector<1x1xf32>,
    return
  }
  func.func @transform_0(%arg0: i32, %arg1: memref<1xi32, #tpu.memory_space<smem>>) -> (i32, i32) {
    %c0_i32 = arith.constant 0 : i32
    %c0_i32_0 = arith.constant 0 : i32
    %c0_i32_1 = arith.constant 0 : i32
    return %c0_i32, %c0_i32_0 : i32, i32
  }
  func.func @transform_1(%arg0: i32, %arg1: memref<1xi32, #tpu.memory_space<smem>>) -> (i32, i32) {
    %c0_i32 = arith.constant 0 : i32
    %c0_i32_0 = arith.constant 0 : i32
    %c0_i32_1 = arith.constant 0 : i32
    return %c0_i32, %c0_i32_0 : i32, i32
  }
  func.func @transform_2(%arg0: i32, %arg1: memref<1xi32, #tpu.memory_space<smem>>) -> (i32, i32) {
    %c0_i32 = arith.constant 0 : i32
    %c0_i32_0 = arith.constant 0 : i32
    %c0_i32_1 = arith.constant 0 : i32
    return %c0_i32, %c0_i32_0 : i32, i32
  }
  func.func @transform_3(%arg0: i32, %arg1: memref<1xi32, #tpu.memory_space<smem>>) -> (i32, i32) {
    %c0_i32 = arith.constant 0 : i32
    %c0_i32_0 = arith.constant 0 : i32
    %c0_i32_1 = arith.constant 0 : i32
    return %c0_i32, %c0_i32_0 : i32, i32
  }
  func.func @transform_4(%arg0: i32, %arg1: memref<1xi32, #tpu.memory_space<smem>>) -> (i32, i32) {
    %c0_i32 = arith.constant 0 : i32
    %c0_i32_0 = arith.constant 0 : i32
    %c0_i32_1 = arith.constant 0 : i32
    return %c0_i32, %c0_i32_0 : i32, i32
  }
  func.func @transform_5(%arg0: i32, %arg1: memref<1xi32, #tpu.memory_space<smem>>) -> (i32, i32) {
    %c0_i32 = arith.constant 0 : i32
    %c0_i32_0 = arith.constant 0 : i32
    %c0_i32_1 = arith.constant 0 : i32
    return %c0_i32, %c0_i32_0 : i32, i32
  }
  func.func @transform_6(%arg0: i32, %arg1: memref<1xi32, #tpu.memory_space<smem>>) -> (i32, i32) {
    %c0_i32 = arith.constant 0 : i32
    %c0_i32_0 = arith.constant 0 : i32
    %c0_i32_1 = arith.constant 0 : i32
    return %c0_i32, %c0_i32_0 : i32, i32
  }
  func.func @transform_7(%arg0: i32, %arg1: memref<1xi32, #tpu.memory_space<smem>>) -> (i32, i32) {
    %c0_i32 = arith.constant 0 : i32
    %c0_i32_0 = arith.constant 0 : i32
    %c0_i32_1 = arith.constant 0 : i32
    return %c0_i32, %c0_i32_0 : i32, i32
  }
  func.func @transform_8(%arg0: i32, %arg1: memref<1xi32, #tpu.memory_space<smem>>) -> (i32, i32) {
    %c0_i32 = arith.constant 0 : i32
    %c0_i32_0 = arith.constant 0 : i32
    %c0_i32_1 = arith.constant 0 : i32
    return %c0_i32, %c0_i32_0 : i32, i32
  }
}

</mosaic_0001>

<bundles_post_ra>
// kernel: run_decode.1
= control target key start
LH: loop header
LB: loop body
LE: loop exit
PB: predicated region body
PF: predicated region fallthrough
CT: control target
= control target key end

     0   :  { %s2897_s0 = inlined_call_operand.<no memory space> [shape: s32[1], index: 0, kind: input, shape index: {}]   ;;  %s2898_s1 = inlined_call_operand.vmem [shape: bf16[16,128], index: 1, kind: input, shape index: {}]   ;;  %s2899_s2 = inlined_call_operand.vmem [shape: bf16[256,128], index: 2, kind: input, shape index: {}]   ;;  %s2900_s3 = inlined_call_operand.hbm [shape: bf16[128,384], index: 3, kind: input, shape index: {}]   ;;  %s2901_s4 = inlined_call_operand.hbm [shape: bf16[128,128], index: 4, kind: input, shape index: {}]   ;;  %s2902_s5 = inlined_call_operand.hbm [shape: bf16[128,256], index: 5, kind: input, shape index: {}]   ;;  %s2903_s6 = inlined_call_operand.hbm [shape: bf16[256,128], index: 6, kind: input, shape index: {}]   ;;  %s2904_s7 = inlined_call_operand.hbm [shape: bf16[128,256], index: 7, kind: input, shape index: {}]   ;;  %s2905_s8 = inlined_call_operand.vmem [shape: s32[4,1], index: 8, kind: output, shape index: {0}]   ;;  %s2906_s9 = inlined_call_operand.vmem [shape: f32[4,1], index: 9, kind: output, shape index: {1}]  }
   0x1   :  { %15 = sst [smem:[#allocation6]] %s2897_s0 }
   0x2   :  { %16 = vsyncpa [#allocation8], 0 }
   0x3   :  { %17 = vsyncpa [#allocation10], 0 }
   0x4   :  { %18 = vsyncpa [#allocation13], 0  ;;  %s2607_s11 = smov 0  }
   0x5 LB: > { %s2536_s12 = smov [#allocation9]   ;;  %s2613_s14 = sadd.s32 4294967295, %s2534_s11   ;;  %s2534_s11 = sphi %s2607_s11, %s24_s11  }
   0x6   : > { %s249_s13 = sshll.u32 %s2536_s12, 4  ;;  %p1845_p0 = scmp.ge.s32.totalorder %s2534_s11, 1  ;;  %s2619_s13 = int_to_ptr.vmem [resolvable:$true] %s249_s13 }
   0x7   : > { %p218_p1 = scmp.lt.s32.totalorder %s2534_s11, 5  ;;  %p2907_p3 = scmp.eq.s32.totalorder %s2613_s14, 0 }
   0x8   : > { %s2537_s15 = smov [#allocation12]   ;;  %s2538_s18 = smov [#allocation7]  }
   0x9   : > { %p2621_p4 = pnand %p1845_p0, %p218_p1  ;;  %s275_s16 = sshll.u32 %s2537_s15, 4  ;;  %s2627_s16 = int_to_ptr.vmem [resolvable:$true] %s275_s16 }
   0xa   : > { %s236_s19 = sshll.u32 %s2538_s18, 4  ;;  %s2376_s22 = scalar_lea.hbm %s2901_s4, 1024  ;;  %s2635_s19 = int_to_ptr.vmem [resolvable:$true] %s236_s19 }
   0xb   : > { %s2909_s0 = scalar_select %p2621_p4, 1, 0 }
   0xc   : > { %p2160_p5 = pneg %p2621_p4  ;;  %p2377_p7 = scmp.ne.s32.totalorder %s2901_s4, %s2376_s22 }
   0xd   : > { %p2383_p11 = scmp.lt.u32.totalorder %s2376_s22, %s2901_s4 }
   0xe   : > { %p2631_p6 = pnand %p2907_p3, %p2160_p5 }
  0x10   : > { %p2645_p8 = pneg %p2631_p6 }
  0x12   : > { %p2379_p9 = pnand %p2645_p8, %p2377_p7 }
  0x14   : > { %p2380_p10 = pneg %p2379_p9 }
  0x16   : > { %p2385_p12 = pnand %p2383_p11, %p2380_p10 }
  0x18   : > { %2388 = shalt.err (!%p2385_p12)
}
  0x19   : > { %s2389_s28 = scalar_lea.vmem %s2619_s13, 1024  ;;  %p2397_p5 = scmp.lt.s32.totalorder %s2619_s13, %s2619_s13 }
  0x1a   : > { %p2390_p13 = scmp.ne.s32.totalorder %s2619_s13, %s2389_s28  ;;  %p2398_p2 = scmp.lt.s32.totalorder %s2389_s28, %s2389_s28 }
  0x1c   : > { %p2392_p0 = pnand %p2390_p13, %p2645_p8  ;;  %p2399_p7 = por %p2398_p2, %p2397_p5 }
  0x1e   : > { %p2393_p1 = pneg %p2392_p0 }
  0x20   : > { %p2400_p9 = pnand %p2399_p7, %p2393_p1 }
  0x22   : > { %2403 = shalt.err (!%p2400_p9)
}
  0x23   : > { %s2539_s29 = smov 64   ;;  %s2540_s30 = smov 4  }
  0x24   : > { %2166 = dma.hbm_to_vmem [thread:$0]  (!%p2631_p6), %s2901_s4, 1024, %s2619_s13, [#allocation10], %s2539_s29, %s2539_s29, %s2540_s30  }
  0x25   : > { %s2404_s20 = scalar_lea.hbm %s2903_s6, 2048 }
  0x26   : > { %p2405_p2 = scmp.ne.s32.totalorder %s2903_s6, %s2404_s20  ;;  %p2411_p12 = scmp.lt.u32.totalorder %s2404_s20, %s2903_s6 }
  0x28   : > { %p2407_p10 = pnand %p2405_p2, %p2645_p8 }
  0x2a   : > { %p2408_p11 = pneg %p2407_p10 }
  0x2c   : > { %p2413_p13 = pnand %p2411_p12, %p2408_p11 }
  0x2e   : > { %2416 = shalt.err (!%p2413_p13)
}
  0x2f   : > { %s2417_s13 = scalar_lea.vmem %s2627_s16, 2048  ;;  %p2425_p7 = scmp.lt.s32.totalorder %s2627_s16, %s2627_s16 }
  0x30   : > { %p2418_p0 = scmp.ne.s32.totalorder %s2627_s16, %s2417_s13  ;;  %p2426_p9 = scmp.lt.s32.totalorder %s2417_s13, %s2417_s13 }
  0x32   : > { %p2420_p1 = pnand %p2418_p0, %p2645_p8  ;;  %p2427_p2 = por %p2426_p9, %p2425_p7 }
  0x34   : > { %p2421_p5 = pneg %p2420_p1 }
  0x36   : > { %p2428_p10 = pnand %p2427_p2, %p2421_p5 }
  0x38   : > { %2431 = shalt.err (!%p2428_p10)
}
  0x39   : > { %2172 = dma.hbm_to_vmem [thread:$0]  (!%p2631_p6), %s2903_s6, 2048, %s2627_s16, [#allocation13], %s2539_s29, %s2539_s29, %s2540_s30  }
  0x3a   : > { %s2432_s12 = scalar_lea.hbm %s2900_s3, 3072 }
  0x3b   : > { %p2433_p11 = scmp.ne.s32.totalorder %s2900_s3, %s2432_s12  ;;  %p2439_p0 = scmp.lt.u32.totalorder %s2432_s12, %s2900_s3 }
  0x3d   : > { %p2435_p12 = pnand %p2433_p11, %p2645_p8 }
  0x3f   : > { %p2436_p13 = pneg %p2435_p12 }
  0x41   : > { %p2441_p1 = pnand %p2439_p0, %p2436_p13 }
  0x43   : > { %2444 = shalt.err (!%p2441_p1)
}
  0x44   : > { %s2445_s16 = scalar_lea.vmem %s2635_s19, 3072  ;;  %p2453_p2 = scmp.lt.s32.totalorder %s2635_s19, %s2635_s19 }
  0x45   : > { %p2446_p5 = scmp.ne.s32.totalorder %s2635_s19, %s2445_s16  ;;  %p2454_p10 = scmp.lt.s32.totalorder %s2445_s16, %s2445_s16 }
  0x47   : > { %p2448_p7 = pnand %p2446_p5, %p2645_p8  ;;  %p2455_p11 = por %p2454_p10, %p2453_p2 }
  0x49   : > { %p2449_p9 = pneg %p2448_p7 }
  0x4b   : > { %p2456_p12 = pnand %p2455_p11, %p2449_p9 }
  0x4d   : > { %2459 = shalt.err (!%p2456_p12)
}
  0x4e   : > { %s2541_s29 = smov 192   ;;  %s2542_s30 = smov 12  }
  0x4f   : > { %2163 = dma.hbm_to_vmem [thread:$0]  (!%p2631_p6), %s2900_s3, 3072, %s2635_s19, [#allocation8], %s2541_s29, %s2541_s29, %s2542_s30  }
  0x50   : > { %s2543_s24 = smov [#allocation11]   ;;  %s2460_s28 = scalar_lea.hbm %s2902_s5, 2048 }
  0x51   : > { %s262_s13 = sshll.u32 %s2543_s24, 4  ;;  %p2461_p13 = scmp.ne.s32.totalorder %s2902_s5, %s2460_s28  ;;  %s263_s13 = int_to_ptr.vmem [resolvable:$true] %s262_s13 }
  0x52   : > { %p2467_p5 = scmp.lt.u32.totalorder %s2460_s28, %s2902_s5 }
  0x53   : > { %p2463_p0 = pnand %p2461_p13, %p2645_p8 }
  0x55   : > { %p2464_p1 = pneg %p2463_p0 }
  0x57   : > { %p2469_p7 = pnand %p2467_p5, %p2464_p1 }
  0x59   : > { %2472 = shalt.err (!%p2469_p7)
}
  0x5a   : > { %s2473_s19 = scalar_lea.vmem %s263_s13, 2048  ;;  %p2481_p11 = scmp.lt.s32.totalorder %s263_s13, %s263_s13 }
  0x5b   : > { %p2474_p9 = scmp.ne.s32.totalorder %s263_s13, %s2473_s19  ;;  %p2482_p12 = scmp.lt.s32.totalorder %s2473_s19, %s2473_s19 }
  0x5d   : > { %p2476_p2 = pnand %p2474_p9, %p2645_p8  ;;  %p2483_p3 = por %p2482_p12, %p2481_p11 }
  0x5f   : > { %p2477_p10 = pneg %p2476_p2 }
  0x61   : > { %p2484_p4 = pnand %p2483_p3, %p2477_p10 }
  0x63   : > { %2487 = shalt.err (!%p2484_p4)
}
  0x64   : > { %s2544_s20 = smov 128   ;;  %s2545_s21 = smov 8  }
  0x65   : > { %2169 = dma.hbm_to_vmem [thread:$0]  (!%p2631_p6), %s2902_s5, 2048, %s263_s13, [#allocation10], %s2544_s20, %s2544_s20, %s2545_s21  }
  0x66   : > { %s2546_s30 = smov [#allocation14]   ;;  %s2488_s26 = scalar_lea.hbm %s2904_s7, 2048 }
  0x67   : > { %s288_s22 = sshll.u32 %s2546_s30, 4  ;;  %p2489_p3 = scmp.ne.s32.totalorder %s2904_s7, %s2488_s26  ;;  %s289_s22 = int_to_ptr.vmem [resolvable:$true] %s288_s22 }
  0x68   : > { %p2495_p0 = scmp.lt.u32.totalorder %s2488_s26, %s2904_s7 }
  0x69   : > { %p2491_p4 = pnand %p2489_p3, %p2645_p8 }
  0x6b   : > { %p2492_p13 = pneg %p2491_p4 }
  0x6d   : > { %p2497_p1 = pnand %p2495_p0, %p2492_p13 }
  0x6f   : > { %2500 = shalt.err (!%p2497_p1)
}
  0x70   : > { %s2501_s13 = scalar_lea.vmem %s289_s22, 2048  ;;  %p2509_p2 = scmp.lt.s32.totalorder %s289_s22, %s289_s22 }
  0x71   : > { %p2502_p5 = scmp.ne.s32.totalorder %s289_s22, %s2501_s13  ;;  %p2510_p10 = scmp.lt.s32.totalorder %s2501_s13, %s2501_s13 }
  0x73   : > { %p2504_p7 = pnand %p2502_p5, %p2645_p8  ;;  %p2511_p11 = por %p2510_p10, %p2509_p2 }
  0x75   : > { %p2505_p9 = pneg %p2504_p7 }
  0x77   : > { %p2512_p12 = pnand %p2511_p11, %p2505_p9 }
  0x79   : > { %2515 = shalt.err (!%p2512_p12)
}
  0x7a   : > { %2175 = dma.hbm_to_vmem [thread:$0]  (!%p2631_p6), %s2904_s7, 2048, %s289_s22, [#allocation13], %s2544_s20, %s2544_s20, %s2545_s21  }
  0x7b   : > { %p2912_p3 = scmp.ne.s32.totalorder %s2909_s0, 0 }
  0x7c   : > { %p2913_p4 = scmp.eq.s32.totalorder (!%p2912_p3), %s2613_s14, 0 }
  0x7d   : > { %304 = sbr.rel (%p2912_p3) target bundleno = 2785 (0xae1), region = 48 }
  0x84   : > { %2521 = dma.done.wait (%p2913_p4), [#allocation8], 3072   ;;  %p2914_p8 = pmov %p2913_p4 }
  0x85   : > { %p2915_p13 = pmov %p2913_p4 }
  0x86   : > { %2523 = vsyncadd (%p2914_p8), [#allocation8], 4294964224 }
  0x87   : > { %2525 = dma.done.wait (%p2915_p13), [#allocation10], 3072   ;;  %p2916_p0 = pmov %p2913_p4 }
  0x89   : > { %2527 = vsyncadd (%p2916_p0), [#allocation10], 4294964224  ;;  %p2917_p1 = pmov %p2916_p0 }
  0x8a   : > { %p2918_p6 = pmov %p2916_p0 }
  0x8b   : > { %2529 = dma.done.wait (%p2917_p1), [#allocation13], 4096  }
  0x8c   : > { %2531 = vsyncadd (%p2918_p6), [#allocation13], 4294963200  ;;  %s2762_s0 = sld [smem:[#allocation6]]  ;;  %p2919_p5 = scmp.ne.s32.totalorder %s2613_s14, 0 }
  0x8d   : > { %v2212_v0 = vld [vmem:[#allocation7 + $0x4] ss:$12 sps:$4 sm:$0xff] (!%p2919_p5)   ;;  %v2547_v1 = vmov (!%p2919_p5), 0.0   ;;  %v2214_v2 = vld [vmem:[#allocation7 + $0x8] ss:$12 sps:$4 sm:$0xff] (!%p2919_p5)   ;;  %vm2548_vm0 = vmmov (!%p2919_p5), 0   ;;  %v606_v6 = vlaneseq (!%p2919_p5) }
  0x8e   : > { %351 = sbr.rel (%p2919_p5) target bundleno = 391 (0x187), region = 72  ;;  %2066 = vmatprep.subr.bf16.mxu1 (!%p2919_p5), %v2547_v1  ;;  %2082 = vmatprep.mubr.msk.bf16.mxu1 (!%p2919_p5), %vm2548_vm0, %v2547_v1  ;;  %v2215_v3 = vld [vmem:[#allocation7] ss:$12 sps:$4 sm:$0xff] (!%p2919_p5)   ;;  %v2216_v4 = vld [vmem:[#allocation7 + $0x1c] ss:$12 sps:$4 sm:$0xff] (!%p2919_p5)   ;;  %v2549_v5 = vmov (!%p2919_p5), 0  }
  0x8f   : > { %520 = vmatprep.subr.bf16.mxu0 (!%p2919_p5), %v2212_v0  ;;  %2067 = vmatpush3.bf16.msra.mxu1 (!%p2919_p5), %v2214_v2  ;;  %v2218_v7 = vld [vmem:[#allocation7 + $0x20] ss:$12 sps:$4 sm:$0xff] (!%p2919_p5)   ;;  %v2219_v8 = vld [vmem:[#allocation7 + $0x18] ss:$12 sps:$4 sm:$0xff] (!%p2919_p5)   ;;  %v607_v11 = vshrl.u32 (!%p2919_p5), %v606_v6, 7  ;;  %vm628_vm3 = vcmask (!%p2919_p5), 1040384  }
  0x90   : > { %552 = vmatprep.mubr.bf16.mxu0 (!%p2919_p5), %v2549_v5  ;;  %521 = vmatpush1.bf16.msra.mxu0 (!%p2919_p5), %v2215_v3  ;;  %v2220_v9 = vld [vmem:[#allocation7 + $0x34] ss:$12 sps:$4 sm:$0xff] (!%p2919_p5)   ;;  %v2222_v10 = vld [vmem:[#allocation7 + $0x38] ss:$12 sps:$4 sm:$0xff] (!%p2919_p5)   ;;  %v2223_v12 = vld [vmem:[#allocation7 + $0x30] ss:$12 sps:$4 sm:$0xff] (!%p2919_p5)  }
  0x91   : > { %2068 = vmatprep.subr.bf16.mxu1 (!%p2919_p5), %v2547_v1  ;;  %522 = vmatprep.subr.bf16.mxu0 (!%p2919_p5), %v2216_v4  ;;  %v2224_v13 = vld [vmem:[#allocation7 + $0x4c] ss:$12 sps:$4 sm:$0xff] (!%p2919_p5)   ;;  %v2226_v14 = vld [vmem:[#allocation7 + $0x50] ss:$12 sps:$4 sm:$0xff] (!%p2919_p5)   ;;  %v608_v15 = vadd.s32 (!%p2919_p5), 8, %v607_v11 }
  0x92   : > { %s1857_s17 = sadd.s32 4294967295, %s2762_s0  ;;  %v2227_v16 = vld [vmem:[#allocation7 + $0x48] ss:$12 sps:$4 sm:$0xff] (!%p2919_p5)   ;;  %v2228_v18 = vld [vmem:[#allocation7 + $0x64] ss:$12 sps:$4 sm:$0xff] (!%p2919_p5)  }
  0x93   : > { %s2768_s25 = sadd.s32 %s1857_s17, %s2613_s14  ;;  %2069 = vmatpush3.bf16.msra.mxu1 (!%p2919_p5), %v2218_v7  ;;  %v609_v17 = vstv (!%p2919_p5), %s1857_s17  ;;  %v2230_v19 = vld [vmem:[#allocation7 + $0x68] ss:$12 sps:$4 sm:$0xff] (!%p2919_p5)   ;;  %v2231_v20 = vld [vmem:[#allocation7 + $0x60] ss:$12 sps:$4 sm:$0xff] (!%p2919_p5)   ;;  %v2235_v28 = vld [vmem:[#allocation7 + $0x78] ss:$12 sps:$4 sm:$0xff] (!%p2919_p5)  }
  0x94   : > { %523 = vmatpush1.bf16.msra.mxu0 (!%p2919_p5), %v2219_v8  ;;  %2070 = vmatprep.subr.bf16.mxu1 (!%p2919_p5), %v2547_v1  ;;  %vm610_vm1 = vcmp.eq.s32.totalorder (!%p2919_p5), %v607_v11, %v609_v17  ;;  %vm611_vm2 = vcmp.eq.s32.totalorder (!%p2919_p5), %v608_v15, %v609_v17  ;;  %v2232_v21 = vld [vmem:[#allocation7 + $0x7c] ss:$12 sps:$4 sm:$0xff] (!%p2919_p5)   ;;  %v2234_v25 = vld [vmem:[#allocation7 + $0x80] ss:$12 sps:$4 sm:$0xff] (!%p2919_p5)   ;;  %v2238_v32 = vld [vmem:[#allocation7 + $0x98] ss:$12 sps:$4 sm:$0xff] (!%p2919_p5)  }
  0x95   : > { %524 = vmatprep.subr.bf16.mxu0 %v2220_v9  ;;  %v352_v22 = vld [vmem:[%s2898_s1] sm:$0xff]   ;;  %v1884_v23 = vsel %vm610_vm1, 1.0, %v2547_v1  ;;  %v1885_v24 = vsel %vm611_vm2, 1.0, %v2547_v1  ;;  %v2240_v35 = vld [vmem:[#allocation7 + $0xac] ss:$12 sps:$4 sm:$0xff]  }
  0x96   : > { %v616_v26 = vunpack.c.l.bf16 %v352_v22  ;;  %v617_v27 = vunpack.c.h.bf16 %v352_v22  ;;  %v2236_v29 = vld [vmem:[#allocation7 + $0x94] ss:$12 sps:$4 sm:$0xff]   ;;  %v2239_v34 = vld [vmem:[#allocation7 + $0x90] ss:$12 sps:$4 sm:$0xff]   ;;  %vm629_vm4 = vsmask.f32 256 }
  0x97   : > { %2071 = vmatpush3.bf16.msra.mxu1 %v2222_v10  ;;  %v2242_v37 = vld [vmem:[#allocation7 + $0xb0] ss:$12 sps:$4 sm:$0xff]   ;;  %v2243_v39 = vld [vmem:[#allocation7 + $0xa8] ss:$12 sps:$4 sm:$0xff]   ;;  %vm630_vm5 = vmand %vm628_vm3, %vm629_vm4 }
  0x98   : > { %525 = vmatpush1.bf16.msra.mxu0 %v2223_v12  ;;  %2072 = vmatprep.subr.bf16.mxu1 %v2547_v1  ;;  %v618_v30 = vmul.f32 %v1884_v23, %v616_v26  ;;  %v619_v31 = vmul.f32 %v1885_v24, %v617_v27  ;;  %v631_v44 = vld [vmem:[#allocation4] sm:$0x1] }
  0x99   : > { %526 = vmatprep.subr.bf16.mxu0 %v2224_v13 }
  0x9a   : > { %v620_v33 = vadd.f32 %v619_v31, %v618_v30 }
  0x9b   : > { %2073 = vmatpush3.bf16.msra.mxu1 %v2226_v14 }
  0x9c   : > { %527 = vmatpush1.bf16.msra.mxu0 %v2227_v16  ;;  %2074 = vmatprep.subr.bf16.mxu1 %v2547_v1  ;;  %v621_v36 = vrot.slane %v620_v33, 4 }
  0x9d   : > { %528 = vmatprep.subr.bf16.mxu0 %v2228_v18 }
  0x9e   : > { %v622_v38 = vadd.f32 %v621_v36, %v620_v33 }
  0x9f   : > { %2075 = vmatpush3.bf16.msra.mxu1 %v2230_v19 }
  0xa0   : > { %529 = vmatpush1.bf16.msra.mxu0 %v2231_v20  ;;  %2076 = vmatprep.subr.bf16.mxu1 %v2547_v1  ;;  %v623_v40 = vrot.slane %v622_v38, 2 }
  0xa1   : > { %530 = vmatprep.subr.bf16.mxu0 %v2232_v21 }
  0xa2   : > { %v624_v41 = vadd.f32 %v623_v40, %v622_v38 }
  0xa3   : > { %2077 = vmatpush3.bf16.msra.mxu1 %v2234_v25 }
  0xa4   : > { %531 = vmatpush1.bf16.msra.mxu0 %v2235_v28  ;;  %2078 = vmatprep.subr.bf16.mxu1 %v2547_v1  ;;  %v625_v42 = vrot.slane %v624_v41, 1 }
  0xa5   : > { %532 = vmatprep.subr.bf16.mxu0 %v2236_v29 }
  0xa6   : > { %v626_v43 = vadd.f32 %v625_v42, %v624_v41 }
  0xa7   : > { %2079 = vmatpush3.bf16.msra.mxu1 %v2238_v32 }
  0xa8   : > { %533 = vmatpush1.bf16.msra.mxu0 %v2239_v34  ;;  %2080 = vmatprep.subr.bf16.mxu1 %v2547_v1  ;;  %v627_v45 = vpack.c.bf16 %v626_v43, %v626_v43 }
  0xa9   : > { %534 = vmatprep.subr.bf16.mxu0 %v2240_v35 }
  0xaa   : > { %v632_v46 = vsel %vm630_vm5, %v627_v45, %v631_v44 }
  0xab   : > { %2081 = vmatpush3.bf16.msra.mxu1 %v2242_v37  ;;  %633 = vst [vmem:[#allocation4] sm:$0x1] %v632_v46 }
  0xac   : > { %535 = vmatpush1.bf16.msra.mxu0 %v2243_v39 }
  0xae   : > { %2083 = vmatmul.mubr.bf16.vlgmr.msra.gmra.mrb[0].mxu1 %v352_v22 }
  0xaf   : > { %553 = vmatmul.mubr.bf16.vlgmr.msra.gmra.mrb[0].mxu0 %v352_v22 }
 0x181   : > { %v595_v47 = vpop.f32.mrb[0].mxu1 }
 0x182   : > { %604 = vst [vmem:[#allocation3] sm:$0xff] %v595_v47  ;;  %v554_v48 = vpop.f32.mrb[0].mxu0  ;;  %v2084_v49 = vpop.f32.mrb[1].mxu1 }
 0x183   : > { %v555_v50 = vpop.f32.mrb[1].mxu0  ;;  %v598_v51 = vpop.f32.mrb[2].mxu1 }
 0x184   : > { %602 = vst [vmem:[#allocation2] sm:$0xff] %v555_v50  ;;  %605 = vst [vmem:[#allocation3 + $0x8] sm:$0xff] %v598_v51  ;;  %v557_v52 = vpop.f32.mrb[2].mxu0  ;;  %v2085_v53 = vpop.f32.mrb[3].mxu1 }
 0x185   : > { %v558_v54 = vpop.f32.mrb[3].mxu0 }
 0x186   : > { %603 = vst [vmem:[#allocation2 + $0x8] sm:$0xff] %v558_v54 }
 0x187 PF: > { %v2246_v55 = vld [vmem:[#allocation7 + $0x4] ss:$12 sps:$4 sm:$0xff]   ;;  %v2248_v56 = vld [vmem:[#allocation7] ss:$12 sps:$4 sm:$0xff]   ;;  %v2550_v57 = vmov 0   ;;  %v2551_v58 = vmov 0.0   ;;  %v928_v33 = vlaneseq  ;;  %v930_v35 = vstv %s2768_s25  ;;  %s1761_s17 = scalar_lea.vmem %s2905_s8, %s2613_s14  ;;  %s1764_s20 = scalar_lea.vmem %s2906_s9, %s2613_s14 }
 0x188   : > { %827 = vmatprep.mubr.bf16.mxu0 %v2550_v57  ;;  %2086 = vmatprep.subr.bf16.mxu1 %v2551_v58  ;;  %v2249_v59 = vld [vmem:[#allocation7 + $0x1c] ss:$12 sps:$4 sm:$0xff]   ;;  %v2251_v60 = vld [vmem:[#allocation7 + $0x18] ss:$12 sps:$4 sm:$0xff]   ;;  %v2252_v61 = vld [vmem:[#allocation7 + $0x34] ss:$12 sps:$4 sm:$0xff]  }
 0x189   : > { %795 = vmatprep.subr.bf16.mxu0 %v2246_v55  ;;  %v2254_v62 = vld [vmem:[#allocation7 + $0x30] ss:$12 sps:$4 sm:$0xff]   ;;  %v2255_v63 = vld [vmem:[#allocation7 + $0x4c] ss:$12 sps:$4 sm:$0xff]   ;;  %v2257_v0 = vld [vmem:[#allocation7 + $0x48] ss:$12 sps:$4 sm:$0xff]  }
 0x18a   : > { %796 = vmatpush1.bf16.msra.mxu0 %v2248_v56  ;;  %v2270_v1 = vld [vmem:[#allocation7 + $0x8] ss:$12 sps:$4 sm:$0xff]   ;;  %v2258_v2 = vld [vmem:[#allocation7 + $0x64] ss:$12 sps:$4 sm:$0xff]   ;;  %v2271_v3 = vld [vmem:[#allocation7 + $0x20] ss:$12 sps:$4 sm:$0xff]  }
 0x18b   : > { %797 = vmatprep.subr.bf16.mxu0 %v2249_v59  ;;  %2087 = vmatpush3.bf16.msra.mxu1 %v2270_v1  ;;  %v2260_v4 = vld [vmem:[#allocation7 + $0x60] ss:$12 sps:$4 sm:$0xff]   ;;  %v2261_v5 = vld [vmem:[#allocation7 + $0x7c] ss:$12 sps:$4 sm:$0xff]   ;;  %v2263_v6 = vld [vmem:[#allocation7 + $0x78] ss:$12 sps:$4 sm:$0xff]  }
 0x18c   : > { %2088 = vmatprep.subr.bf16.mxu1 %v2551_v58  ;;  %v2272_v7 = vld [vmem:[#allocation7 + $0x38] ss:$12 sps:$4 sm:$0xff]   ;;  %v2264_v8 = vld [vmem:[#allocation7 + $0x94] ss:$12 sps:$4 sm:$0xff]   ;;  %v2273_v9 = vld [vmem:[#allocation7 + $0x50] ss:$12 sps:$4 sm:$0xff]  }
 0x18d   : > { %v2266_v10 = vld [vmem:[#allocation7 + $0x90] ss:$12 sps:$4 sm:$0xff]   ;;  %v2267_v11 = vld [vmem:[#allocation7 + $0xac] ss:$12 sps:$4 sm:$0xff]   ;;  %v2274_v12 = vld [vmem:[#allocation7 + $0x68] ss:$12 sps:$4 sm:$0xff]  }
 0x18e   : > { %798 = vmatpush1.bf16.msra.mxu0 %v2251_v60  ;;  %v2269_v13 = vld [vmem:[#allocation7 + $0xa8] ss:$12 sps:$4 sm:$0xff]   ;;  %v2275_v14 = vld [vmem:[#allocation7 + $0x80] ss:$12 sps:$4 sm:$0xff]   ;;  %v2794_v15 = vld [vmem:[#allocation4] sm:$0x1] }
 0x18f   : > { %799 = vmatprep.subr.bf16.mxu0 %v2252_v61  ;;  %2089 = vmatpush3.bf16.msra.mxu1 %v2271_v3  ;;  %v2276_v16 = vld [vmem:[#allocation7 + $0x98] ss:$12 sps:$4 sm:$0xff]   ;;  %v2277_v17 = vld [vmem:[#allocation7 + $0xb0] ss:$12 sps:$4 sm:$0xff]   ;;  %vm2552_vm6 = vmmov 0   ;;  %s876_s21 = scalar_lea.vmem [#allocation2], %s2768_s25 }
 0x190   : > { %2090 = vmatprep.subr.bf16.mxu1 %v2551_v58  ;;  %2102 = vmatprep.mubr.msk.bf16.mxu1 %vm2552_vm6, %v2551_v58  ;;  %s878_s16 = scalar_lea.vmem [#allocation3], %s2768_s25  ;;  %v2814_v34 = vand.u32 127, %v928_v33  ;;  %vm933_vm8 = vcmask 122880   ;;  %v2278_v48 = vld [vmem:[#allocation9] sm:$0xff]   ;;  %v2279_v49 = vld [vmem:[#allocation9 + $0x8] sm:$0xff]   ;;  %v2280_v50 = vld [vmem:[#allocation9 + $0x10] sm:$0xff]  }
 0x191   : > { %v2281_v51 = vld [vmem:[#allocation9 + $0x18] sm:$0xff]   ;;  %v2282_v52 = vld [vmem:[#allocation9 + $0x20] sm:$0xff]   ;;  %v2283_v53 = vld [vmem:[#allocation9 + $0x28] sm:$0xff]   ;;  %vm946_vm9 = vcmask 130048   ;;  %vm1546_vm10 = vcmask 1040384   ;;  %vm1762_vm13 = vcmask 0  }
 0x192   : > { %800 = vmatpush1.bf16.msra.mxu0 %v2254_v62  ;;  %vm931_vm7 = vcmp.le.s32.totalorder %v2814_v34, %v930_v35  ;;  %v2284_v54 = vld [vmem:[#allocation9 + $0x30] sm:$0xff]   ;;  %v2285_v61 = vld [vmem:[#allocation9 + $0x38] sm:$0xff]   ;;  %v2286_v62 = vld [vmem:[#allocation11] ss:$8 sps:$4 sm:$0xff]   ;;  %vm1756_vm2 = vsmask.f32 256 }
 0x193   : > { %801 = vmatprep.subr.bf16.mxu0 %v2255_v63  ;;  %2091 = vmatpush3.bf16.msra.mxu1 %v2272_v7  ;;  %v2288_v63 = vld [vmem:[#allocation11 + $0x4] ss:$8 sps:$4 sm:$0xff]   ;;  %v2289_v1 = vld [vmem:[#allocation11 + $0x10] ss:$8 sps:$4 sm:$0xff]   ;;  %v2297_v3 = vld [vmem:[#allocation11 + $0x34] ss:$8 sps:$4 sm:$0xff]  }
 0x194   : > { %2092 = vmatprep.subr.bf16.mxu1 %v2551_v58  ;;  %v2303_v7 = vld [vmem:[#allocation11 + $0x54] ss:$8 sps:$4 sm:$0xff]   ;;  %vm1757_vm3 = vmand %vm1546_vm10, %vm1756_vm2 }
 0x196   : > { %802 = vmatpush1.bf16.msra.mxu0 %v2257_v0  ;;  %v2291_v0 = vld [vmem:[#allocation11 + $0x14] ss:$8 sps:$4 sm:$0xff]  }
 0x197   : > { %803 = vmatprep.subr.bf16.mxu0 %v2258_v2  ;;  %2093 = vmatpush3.bf16.msra.mxu1 %v2273_v9  ;;  %v2294_v2 = vld [vmem:[#allocation11 + $0x24] ss:$8 sps:$4 sm:$0xff]  }
 0x198   : > { %2094 = vmatprep.subr.bf16.mxu1 %v2551_v58  ;;  %v2306_v9 = vld [vmem:[#allocation11 + $0x64] ss:$8 sps:$4 sm:$0xff]  }
 0x19a   : > { %804 = vmatpush1.bf16.msra.mxu0 %v2260_v4  ;;  %v2295_v4 = vld [vmem:[#allocation11 + $0x30] ss:$8 sps:$4 sm:$0xff]  }
 0x19b   : > { %805 = vmatprep.subr.bf16.mxu0 %v2261_v5  ;;  %2095 = vmatpush3.bf16.msra.mxu1 %v2274_v12  ;;  %v2300_v5 = vld [vmem:[#allocation11 + $0x44] ss:$8 sps:$4 sm:$0xff]  }
 0x19c   : > { %2096 = vmatprep.subr.bf16.mxu1 %v2551_v58 }
 0x19e   : > { %806 = vmatpush1.bf16.msra.mxu0 %v2263_v6  ;;  %v2298_v6 = vld [vmem:[#allocation11 + $0x40] ss:$8 sps:$4 sm:$0xff]  }
 0x19f   : > { %807 = vmatprep.subr.bf16.mxu0 %v2264_v8  ;;  %2097 = vmatpush3.bf16.msra.mxu1 %v2275_v14  ;;  %v2301_v8 = vld [vmem:[#allocation11 + $0x50] ss:$8 sps:$4 sm:$0xff]  }
 0x1a0   : > { %2098 = vmatprep.subr.bf16.mxu1 %v2551_v58 }
 0x1a2   : > { %808 = vmatpush1.bf16.msra.mxu0 %v2266_v10  ;;  %v2304_v10 = vld [vmem:[#allocation11 + $0x60] ss:$8 sps:$4 sm:$0xff]  }
 0x1a3   : > { %809 = vmatprep.subr.bf16.mxu0 %v2267_v11  ;;  %2099 = vmatpush3.bf16.msra.mxu1 %v2276_v16 }
 0x1a4   : > { %2100 = vmatprep.subr.bf16.mxu1 %v2551_v58 }
 0x1a6   : > { %810 = vmatpush1.bf16.msra.mxu0 %v2269_v13 }
 0x1a7   : > { %2118 = vmatprep.subr.bf16.mxu0 %v2551_v58  ;;  %2101 = vmatpush3.bf16.msra.mxu1 %v2277_v17  ;;  %v2309_v17 = vld [vmem:[#allocation11 + $0x74] ss:$8 sps:$4 sm:$0xff]  }
 0x1a8   : > { %2106 = vmatprep.subr.bf16.mxu1 %v2551_v58 }
 0x1a9   : > { %828 = vmatmul.mubr.bf16.vlgmr.msra.gmra.mrb[0].mxu0 %v2794_v15 }
 0x1aa   : > { %2134 = vmatprep.mubr.msk.bf16.mxu0 %vm2552_vm6, %v2551_v58  ;;  %2103 = vmatmul.mubr.bf16.vlgmr.msra.gmra.mrb[0].mxu1 %v2794_v15 }
 0x1ab   : > { %2108 = vmatprep.mubr.msk.bf16.mxu1 %vm2552_vm6, %v2551_v58  ;;  %2119 = vmatpush3.bf16.msra.mxu0 %v2278_v48  ;;  %v2337_v48 = vld [vmem:[#allocation14 + $0x34] ss:$8 sps:$4 sm:$0xff]  }
 0x1ac   : > { %2120 = vmatprep.subr.bf16.mxu0 %v2551_v58 }
 0x1af   : > { %2121 = vmatpush3.bf16.msra.mxu0 %v2279_v49  ;;  %v2340_v49 = vld [vmem:[#allocation14 + $0x44] ss:$8 sps:$4 sm:$0xff]  }
 0x1b0   : > { %2122 = vmatprep.subr.bf16.mxu0 %v2551_v58 }
 0x1b3   : > { %2123 = vmatpush3.bf16.msra.mxu0 %v2280_v50  ;;  %v2338_v50 = vld [vmem:[#allocation14 + $0x40] ss:$8 sps:$4 sm:$0xff]  }
 0x1b4   : > { %2124 = vmatprep.subr.bf16.mxu0 %v2551_v58 }
 0x1b7   : > { %2125 = vmatpush3.bf16.msra.mxu0 %v2281_v51  ;;  %v2343_v51 = vld [vmem:[#allocation14 + $0x54] ss:$8 sps:$4 sm:$0xff]  }
 0x1b8   : > { %2126 = vmatprep.subr.bf16.mxu0 %v2551_v58 }
 0x1bb   : > { %2127 = vmatpush3.bf16.msra.mxu0 %v2282_v52  ;;  %v2341_v52 = vld [vmem:[#allocation14 + $0x50] ss:$8 sps:$4 sm:$0xff]  }
 0x1bc   : > { %2128 = vmatprep.subr.bf16.mxu0 %v2551_v58 }
 0x1bf   : > { %2129 = vmatpush3.bf16.msra.mxu0 %v2283_v53 }
 0x1c0   : > { %2130 = vmatprep.subr.bf16.mxu0 %v2551_v58 }
 0x1c3   : > { %2131 = vmatpush3.bf16.msra.mxu0 %v2284_v54 }
 0x1c4   : > { %2132 = vmatprep.subr.bf16.mxu0 %v2551_v58 }
 0x1c7   : > { %2133 = vmatpush3.bf16.msra.mxu0 %v2285_v61 }
 0x27c   : > { %v829_v18 = vpop.f32.mrb[0].mxu0 }
 0x27d   : > { %v831_v19 = vpop.f32.mrb[1].mxu0  ;;  %v886_v25 = vpack.c.bf16 %v829_v18, %v829_v18  ;;  %v870_v26 = vpop.f32.mrb[0].mxu1  ;;  %v2307_v18 = vld [vmem:[#allocation11 + $0x70] ss:$8 sps:$4 sm:$0xff]  }
 0x27e   : > { %877 = vst [vmem:[%s876_s21] sm:$0x1] %v831_v19  ;;  %v833_v20 = vpop.f32.mrb[2].mxu0  ;;  %879 = vst [vmem:[%s878_s16] sm:$0x1] %v870_v26  ;;  %v2104_v27 = vpop.f32.mrb[1].mxu1  ;;  %v2310_v19 = vld [vmem:[#allocation12 + $0x40] sm:$0xff]   ;;  %v2317_v26 = vld [vmem:[#allocation12 + $0x18] sm:$0xff]  }
 0x27f   : > { %v834_v21 = vpop.f32.mrb[3].mxu0  ;;  %v873_v28 = vpop.f32.mrb[2].mxu1  ;;  %v2311_v20 = vld [vmem:[#allocation12] sm:$0xff]   ;;  %2022 = vmatprep.subr.bf16.mxu0 %v2310_v19 }
 0x280   : > { %v2105_v29 = vpop.f32.mrb[3].mxu1  ;;  %v2312_v21 = vld [vmem:[#allocation12 + $0x48] sm:$0xff]   ;;  %v2318_v27 = vld [vmem:[#allocation12 + $0x60] sm:$0xff]  }
 0x281   : > { %v2319_v28 = vld [vmem:[#allocation12 + $0x20] sm:$0xff]   ;;  %v2320_v29 = vld [vmem:[#allocation12 + $0x68] sm:$0xff]  }
 0x282   : > { %v2352_v19 = vld [vmem:[%s2899_s2 + $0x48] sm:$0xff]  }
 0x285   : > { %v880_v22 = vld [vmem:[#allocation2] sm:$0xff]  ;;  %v881_v23 = vld [vmem:[#allocation2 + $0x8] sm:$0xff]  ;;  %v883_v30 = vld [vmem:[#allocation3] sm:$0xff] }
 0x286   : > { %v882_v24 = vpack.c.bf16 %v881_v23, %v880_v22  ;;  %v884_v31 = vld [vmem:[#allocation3 + $0x8] sm:$0xff]  ;;  %v2313_v22 = vld [vmem:[#allocation12 + $0x8] sm:$0xff]  }
 0x287   : > { %v885_v32 = vpack.c.bf16 %v884_v31, %v883_v30  ;;  %v2314_v23 = vld [vmem:[#allocation12 + $0x50] sm:$0xff]   ;;  %v2321_v30 = vld [vmem:[#allocation12 + $0x28] sm:$0xff]  }
 0x288   : > { %2107 = vmatpush3.bf16.xpose.msra.mxu1 %v882_v24  ;;  %v2315_v24 = vld [vmem:[#allocation12 + $0x10] sm:$0xff]  }
 0x289   : > { %2112 = vmatprep.subr.bf16.mxu1 %v2551_v58  ;;  %v2322_v31 = vld [vmem:[#allocation12 + $0x70] sm:$0xff]  }
 0x28f   : > { %2109 = vmatmul.mubr.bf16.vlgmr.msra.gmra.mrb[4].mxu1 %v886_v25  ;;  %v2316_v25 = vld [vmem:[#allocation12 + $0x58] sm:$0xff]  }
 0x290   : > { %2114 = vmatprep.mubr.msk.bf16.mxu1 %vm2552_vm6, %v2551_v58  ;;  %2113 = vmatpush3.bf16.msra.mxu1 %v885_v32  ;;  %v2292_v58 = vld [vmem:[#allocation11 + $0x20] ss:$8 sps:$4 sm:$0xff]   ;;  %v990_v32 = vunpack.c.l.bf16 %v2794_v15  ;;  %v2329_v15 = vld [vmem:[#allocation14 + $0x10] ss:$8 sps:$4 sm:$0xff]  }
 0x291   : > { %1194 = vmatprep.subr.bf16.mxu1 %v2288_v63  ;;  %v2346_v63 = vld [vmem:[#allocation14 + $0x64] ss:$8 sps:$4 sm:$0xff]  }
 0x362   : > { %v921_v36 = vpop.f32.mrb[4].mxu1 }
 0x363   : > { %v927_v37 = vmul.f32 0.088388346, %v921_v36  ;;  %v2110_v38 = vpop.f32.mrb[5].mxu1 }
 0x364   : > { %v924_v39 = vpop.f32.mrb[6].mxu1 }
 0x365   : > { %v2111_v40 = vpop.f32.mrb[7].mxu1  ;;  %v932_v41 = vsel %vm931_vm7, %v927_v37, -1e+30 }
 0x366   : > { %v934_v42 = vsel %vm933_vm8, %v932_v41, -inf  ;;  %v2323_v40 = vld [vmem:[#allocation12 + $0x30] sm:$0xff]  }
 0x367   : > { %935 = vmax.xlane.f32.xlu0 %v934_v42  ;;  %v2325_v42 = vld [vmem:[#allocation12 + $0x38] sm:$0xff]  }
 0x3f4   : > { %v936_v43 = vpop.xlane.xlu0 %935 }
 0x3f5   : > { %v937_v44 = vsub.f32 %v932_v41, %v936_v43  ;;  %v2324_v41 = vld [vmem:[#allocation12 + $0x78] sm:$0xff]   ;;  %v2326_v43 = vld [vmem:[#allocation14] ss:$8 sps:$4 sm:$0xff]  }
 0x3f7   : > { %v938_v45 = vmul.f32 1.442695, %v937_v44  ;;  %v2328_v44 = vld [vmem:[#allocation14 + $0x4] ss:$8 sps:$4 sm:$0xff]  }
 0x3f9   : > { %2366 = vpow2.f32 %v938_v45  ;;  %v2331_v45 = vld [vmem:[#allocation14 + $0x14] ss:$8 sps:$4 sm:$0xff]  }
 0x403   : > { %v2367_v46 = vpop.eup %2366 }
 0x404   : > { %v940_v47 = vsel %vm933_vm8, %v2367_v46, 0.0 }
 0x405   : > { %941 = vadd.xlane.f32.xlu0 %v940_v47  ;;  %v2332_v47 = vld [vmem:[#allocation14 + $0x20] ss:$8 sps:$4 sm:$0xff]  }
 0x492   : > { %v942_v55 = vpop.xlane.xlu0 %941 }
 0x493   : > { %2368 = vrcp.f32 %v942_v55 }
 0x49d   : > { %v2369_v56 = vpop.eup %2368 }
 0x49e   : > { %v944_v59 = vmul.f32 %v2369_v56, %v2367_v46  ;;  %v2334_v46 = vld [vmem:[#allocation14 + $0x24] ss:$8 sps:$4 sm:$0xff]  }
 0x4a0   : > { %v945_v60 = vpack.c.bf16 %v944_v59, %v944_v59 }
 0x4a2   : > { %2115 = vmatmul.mubr.msk.bf16.vlgmr.msra.gmra.mrb[8].mxu1 %vm946_vm9, %v945_v60 }
 0x4a3   : > { %1226 = vmatprep.mubr.bf16.mxu1 %v2550_v57  ;;  %1195 = vmatpush1.bf16.msra.mxu1 %v2286_v62 }
 0x4a4   : > { %1196 = vmatprep.subr.bf16.mxu1 %v2291_v0  ;;  %v2344_v0 = vld [vmem:[#allocation14 + $0x60] ss:$8 sps:$4 sm:$0xff]  }
 0x4a7   : > { %1197 = vmatpush1.bf16.msra.mxu1 %v2289_v1  ;;  %v2349_v1 = vld [vmem:[#allocation14 + $0x74] ss:$8 sps:$4 sm:$0xff]  }
 0x4a8   : > { %1198 = vmatprep.subr.bf16.mxu1 %v2294_v2  ;;  %v2347_v2 = vld [vmem:[#allocation14 + $0x70] ss:$8 sps:$4 sm:$0xff]  }
 0x4ab   : > { %1199 = vmatpush1.bf16.msra.mxu1 %v2292_v58 }
 0x4ac   : > { %1200 = vmatprep.subr.bf16.mxu1 %v2297_v3 }
 0x4af   : > { %1201 = vmatpush1.bf16.msra.mxu1 %v2295_v4 }
 0x4b0   : > { %1202 = vmatprep.subr.bf16.mxu1 %v2300_v5 }
 0x4b3   : > { %1203 = vmatpush1.bf16.msra.mxu1 %v2298_v6 }
 0x4b4   : > { %1204 = vmatprep.subr.bf16.mxu1 %v2303_v7 }
 0x4b7   : > { %1205 = vmatpush1.bf16.msra.mxu1 %v2301_v8 }
 0x4b8   : > { %1206 = vmatprep.subr.bf16.mxu1 %v2306_v9 }
 0x4bb   : > { %1207 = vmatpush1.bf16.msra.mxu1 %v2304_v10 }
 0x4bc   : > { %1208 = vmatprep.subr.bf16.mxu1 %v2309_v17  ;;  %v2350_v17 = vld [vmem:[%s2899_s2 + $0x40] sm:$0xff]  }
 0x4bf   : > { %1209 = vmatpush1.bf16.msra.mxu1 %v2307_v18  ;;  %v2351_v18 = vld [vmem:[%s2899_s2] sm:$0xff]  }
 0x4c0   : > { %1505 = vmatprep.subr.bf16.mxu1 %v2328_v44 }
 0x575   : > { %v984_v11 = vpop.f32.mrb[8].mxu1 }
 0x576   : > { %v991_v12 = vpack.c.bf16 %v984_v11, %v984_v11  ;;  %v2116_v13 = vpop.f32.mrb[9].mxu1 }
 0x577   : > { %v987_v14 = vpop.f32.mrb[10].mxu1 }
 0x578   : > { %v2117_v16 = vpop.f32.mrb[11].mxu1  ;;  %2135 = vmatmul.mubr.bf16.vlgmr.msra.gmra.mrb[4].mxu0 %v991_v12 }
 0x579   : > { %2023 = vmatpush3.bf16.msra.mxu0 %v2311_v20  ;;  %v2353_v20 = vld [vmem:[%s2899_s2 + $0x8] sm:$0xff]  }
 0x57a   : > { %2024 = vmatprep.subr.bf16.mxu0 %v2312_v21  ;;  %v2354_v21 = vld [vmem:[%s2899_s2 + $0x50] sm:$0xff]  }
 0x57d   : > { %2025 = vmatpush3.bf16.msra.mxu0 %v2313_v22  ;;  %v2355_v22 = vld [vmem:[%s2899_s2 + $0x10] sm:$0xff]  }
 0x57e   : > { %2026 = vmatprep.subr.bf16.mxu0 %v2314_v23  ;;  %v2356_v23 = vld [vmem:[%s2899_s2 + $0x58] sm:$0xff]  }
 0x581   : > { %2027 = vmatpush3.bf16.msra.mxu0 %v2315_v24  ;;  %v2357_v24 = vld [vmem:[%s2899_s2 + $0x18] sm:$0xff]  }
 0x582   : > { %2028 = vmatprep.subr.bf16.mxu0 %v2316_v25  ;;  %v2358_v25 = vld [vmem:[%s2899_s2 + $0x60] sm:$0xff]  }
 0x585   : > { %2029 = vmatpush3.bf16.msra.mxu0 %v2317_v26  ;;  %v2359_v26 = vld [vmem:[%s2899_s2 + $0x20] sm:$0xff]  }
 0x586   : > { %2030 = vmatprep.subr.bf16.mxu0 %v2318_v27  ;;  %v2360_v27 = vld [vmem:[%s2899_s2 + $0x68] sm:$0xff]  }
 0x589   : > { %2031 = vmatpush3.bf16.msra.mxu0 %v2319_v28  ;;  %v2361_v28 = vld [vmem:[%s2899_s2 + $0x28] sm:$0xff]  }
 0x58a   : > { %2032 = vmatprep.subr.bf16.mxu0 %v2320_v29  ;;  %v2362_v29 = vld [vmem:[%s2899_s2 + $0x70] sm:$0xff]  }
 0x58d   : > { %2033 = vmatpush3.bf16.msra.mxu0 %v2321_v30  ;;  %v1565_v30 = vadd.s32 128, %v2814_v34 }
 0x58e   : > { %2034 = vmatprep.subr.bf16.mxu0 %v2322_v31  ;;  %v1568_v31 = vcvt.s32.f32 %v2814_v34 }
 0x591   : > { %2035 = vmatpush3.bf16.msra.mxu0 %v2323_v40 }
 0x592   : > { %2036 = vmatprep.subr.bf16.mxu0 %v2324_v41 }
 0x595   : > { %2037 = vmatpush3.bf16.msra.mxu0 %v2325_v42 }
 0x596   : > { %2044 = vmatprep.subr.bf16.mxu0 %v2350_v17 }
 0x64b   : > { %v1090_v33 = vpop.f32.mrb[4].mxu0 }
 0x64c   : > { %v1096_v35 = vadd.f32 %v1090_v33, %v990_v32  ;;  %v2136_v36 = vpop.f32.mrb[5].mxu0  ;;  %v1569_v32 = vcvt.s32.f32 %v1565_v30 }
 0x64d   : > { %v1093_v37 = vpop.f32.mrb[6].mxu0 }
 0x64e   : > { %v1097_v38 = vpack.c.bf16 %v1096_v35, %v1096_v35  ;;  %v2137_v39 = vpop.f32.mrb[7].mxu0 }
 0x650   : > { %1227 = vmatmul.mubr.bf16.vlgmr.msra.gmra.mrb[12].mxu1 %v1097_v38 }
 0x651   : > { %1537 = vmatprep.mubr.bf16.mxu1 %v2550_v57  ;;  %1506 = vmatpush1.bf16.msra.mxu1 %v2326_v43  ;;  %v2335_v57 = vld [vmem:[#allocation14 + $0x30] ss:$8 sps:$4 sm:$0xff]  }
 0x652   : > { %1507 = vmatprep.subr.bf16.mxu1 %v2331_v45 }
 0x655   : > { %1508 = vmatpush1.bf16.msra.mxu1 %v2329_v15 }
 0x656   : > { %1509 = vmatprep.subr.bf16.mxu1 %v2334_v46 }
 0x659   : > { %1510 = vmatpush1.bf16.msra.mxu1 %v2332_v47 }
 0x65a   : > { %1511 = vmatprep.subr.bf16.mxu1 %v2337_v48  ;;  %v2363_v48 = vld [vmem:[%s2899_s2 + $0x30] sm:$0xff]  }
 0x65d   : > { %1512 = vmatpush1.bf16.msra.mxu1 %v2335_v57  ;;  %v2364_v57 = vld [vmem:[%s2899_s2 + $0x78] sm:$0xff]  }
 0x65e   : > { %1513 = vmatprep.subr.bf16.mxu1 %v2340_v49  ;;  %v2365_v49 = vld [vmem:[%s2899_s2 + $0x38] sm:$0xff]  }
 0x661   : > { %1514 = vmatpush1.bf16.msra.mxu1 %v2338_v50 }
 0x662   : > { %1515 = vmatprep.subr.bf16.mxu1 %v2343_v51 }
 0x665   : > { %1516 = vmatpush1.bf16.msra.mxu1 %v2341_v52 }
 0x666   : > { %1517 = vmatprep.subr.bf16.mxu1 %v2346_v63 }
 0x669   : > { %1518 = vmatpush1.bf16.msra.mxu1 %v2344_v0 }
 0x66a   : > { %1519 = vmatprep.subr.bf16.mxu1 %v2349_v1 }
 0x66d   : > { %1520 = vmatpush1.bf16.msra.mxu1 %v2347_v2 }
 0x723   : > { %v1228_v53 = vpop.f32.mrb[12].mxu1 }
 0x724   : > { %v1235_v54 = vmax.f32 %v1228_v53, 0.0  ;;  %v1230_v55 = vpop.f32.mrb[13].mxu1  ;;  %v2553_v53 = vmov 1.0|1.0  }
 0x725   : > { %v1236_v56 = vmax.f32 %v1230_v55, 0.0  ;;  %v1232_v59 = vpop.f32.mrb[14].mxu1 }
 0x726   : > { %v1233_v60 = vpop.f32.mrb[15].mxu1  ;;  %v1237_v62 = vpack.c.bf16 %v1235_v54, %v1235_v54 }
 0x727   : > { %v1238_v61 = vpack.c.bf16 %v1236_v56, %v1236_v56 }
 0x729   : > { %1399 = vmatprep.mubr.bf16.mxu0 %v1238_v61  ;;  %v1758_v61 = vld [vmem:[#allocation4] sm:$0x1] }
 0x72a   : > { %1400 = vmatmul.mubr.bf16.vlgmr.msra.gmra.mrb[8].mxu0 %v1237_v62 }
 0x72b   : > { %2045 = vmatpush3.bf16.msra.mxu0 %v2351_v18 }
 0x72c   : > { %2046 = vmatprep.subr.bf16.mxu0 %v2352_v19 }
 0x72f   : > { %2047 = vmatpush3.bf16.msra.mxu0 %v2353_v20 }
 0x730   : > { %2048 = vmatprep.subr.bf16.mxu0 %v2354_v21 }
 0x733   : > { %2049 = vmatpush3.bf16.msra.mxu0 %v2355_v22 }
 0x734   : > { %2050 = vmatprep.subr.bf16.mxu0 %v2356_v23 }
 0x737   : > { %2051 = vmatpush3.bf16.msra.mxu0 %v2357_v24 }
 0x738   : > { %2052 = vmatprep.subr.bf16.mxu0 %v2358_v25 }
 0x73b   : > { %2053 = vmatpush3.bf16.msra.mxu0 %v2359_v26 }
 0x73c   : > { %2054 = vmatprep.subr.bf16.mxu0 %v2360_v27 }
 0x73f   : > { %2055 = vmatpush3.bf16.msra.mxu0 %v2361_v28 }
 0x740   : > { %2056 = vmatprep.subr.bf16.mxu0 %v2362_v29 }
 0x743   : > { %2057 = vmatpush3.bf16.msra.mxu0 %v2363_v48 }
 0x744   : > { %2058 = vmatprep.subr.bf16.mxu0 %v2364_v57 }
 0x747   : > { %2059 = vmatpush3.bf16.msra.mxu0 %v2365_v49 }
 0x7fd   : > { %v2038_v58 = vpop.f32.mrb[8].mxu0 }
 0x7fe   : > { %v2039_v3 = vpop.f32.mrb[9].mxu0 }
 0x7ff   : > { %v2040_v4 = vadd.f32 %v2039_v3, %v2038_v58  ;;  %v2041_v5 = vpop.f32.mrb[10].mxu0 }
 0x800   : > { %v2042_v6 = vpop.f32.mrb[11].mxu0 }
 0x801   : > { %v1407_v7 = vadd.f32 %v2040_v4, %v1096_v35 }
 0x803   : > { %v1408_v8 = vpack.c.bf16 %v1407_v7, %v1407_v7 }
 0x805   : > { %1538 = vmatmul.mubr.bf16.vlgmr.msra.gmra.mrb[16].mxu1 %v1408_v8 }
 0x8d8   : > { %v1539_v9 = vpop.f32.mrb[16].mxu1 }
 0x8d9   : > { %v1541_v10 = vpop.f32.mrb[17].mxu1  ;;  %v1547_v11 = vsel %vm1546_vm10, %v1539_v9, -inf }
 0x8da   : > { %v1543_v12 = vpop.f32.mrb[18].mxu1  ;;  %v1548_v13 = vsel %vm1546_vm10, %v1541_v10, -inf }
 0x8db   : > { %v1544_v14 = vpop.f32.mrb[19].mxu1  ;;  %v1549_v16 = vmax.f32 %v1547_v11, %v1548_v13 }
 0x8dd   : > { %1550 = vmax.xlane.f32.xlu1 %v1549_v16 }
 0x96a   : > { %v1551_v33 = vpop.xlane.xlu1 %1550 }
 0x96b   : > { %v1552_v35 = vsub.f32 %v1539_v9, %v1551_v33  ;;  %v1553_v36 = vsub.f32 %v1541_v10, %v1551_v33  ;;  %vm1566_vm11 = vcmp.eq.f32.partialorder %v1539_v9, %v1551_v33  ;;  %vm1567_vm12 = vcmp.eq.f32.partialorder %v1541_v10, %v1551_v33 }
 0x96c   : > { %v1570_v37 = vsel %vm1566_vm11, %v1568_v31, 256.0  ;;  %v1571_v38 = vsel %vm1567_vm12, %v1569_v32, 256.0 }
 0x96d   : > { %v1554_v39 = vmul.f32 1.442695, %v1552_v35  ;;  %v1556_v40 = vmul.f32 1.442695, %v1553_v36  ;;  %v1572_v41 = vsel %vm1546_vm10, %v1570_v37, inf  ;;  %v1573_v42 = vsel %vm1546_vm10, %v1571_v38, inf }
 0x96e   : > { %v1574_v43 = vmin.f32 %v1572_v41, %v1573_v42 }
 0x96f   : > { %2370 = vpow2.f32 %v1554_v39 }
 0x970   : > { %2372 = vpow2.f32 %v1556_v40  ;;  %1575 = vmin.xlane.f32.xlu1 %v1574_v43 }
 0x979   : > { %v2371_v44 = vpop.eup %2370 }
 0x97a   : > { %v2373_v45 = vpop.eup %2372  ;;  %v1558_v15 = vsel %vm1546_vm10, %v2371_v44, 0.0 }
 0x97b   : > { %v1559_v46 = vsel %vm1546_vm10, %v2373_v45, 0.0 }
 0x97c   : > { %v1560_v47 = vadd.f32 %v1559_v46, %v1558_v15 }
 0x97e   : > { %1561 = vadd.xlane.f32.xlu0 %v1560_v47 }
 0x9fd   : > { %v1576_v50 = vpop.xlane.xlu1 %1575 }
 0x9fe   : > { %v2138_v51 = vtrunc.f32 %v1576_v50 }
 0xa00   : > { %v2139_v52 = vcvt.f32.s32 %v2138_v51 }
 0xa02   : > { %vm1578_vm14 = vcmp.eq.s32.totalorder %v2814_v34, %v2139_v52  ;;  %1763 = vst.msk [vmem:[%s1761_s17] sm:$0x1] %vm1762_vm13, %v2139_v52  ;;  %vm1579_vm15 = vcmp.eq.s32.totalorder %v1565_v30, %v2139_v52 }
 0xa03   : > { %vm1987_vm0 = vmpackc.low %vm1578_vm14, %vm1578_vm14 }
 0xa04   : > { %vm1985_vm1 = vmpackc.low %vm1579_vm15, %vm1579_vm15 }
 0xa05   : > { %1986 = vmatprep.mubr.msk.bf16.mxu0 %vm1985_vm1, %v2553_v53 }
 0xa06   : > { %1988 = vmatmul.mubr.msk.bf16.vlgmr.msra.gmra.mrb[12].mxu0 %vm1987_vm0, %v2553_v53 }
 0xa0b   : > { %v1562_v54 = vpop.xlane.xlu0 %1561 }
 0xa0c   : > { %2374 = vrcp.f32 %v1562_v54 }
 0xa16   : > { %v2375_v55 = vpop.eup %2374 }
 0xa17   : > { %1765 = vst.msk [vmem:[%s1764_s20] sm:$0x1] %vm1762_vm13, %v2375_v55 }
 0xad9   : > { %v2060_v56 = vpop.f32.mrb[12].mxu0 }
 0xada   : > { %v2061_v59 = vpop.f32.mrb[13].mxu0 }
 0xadb   : > { %v2062_v60 = vadd.f32 %v2061_v59, %v2060_v56  ;;  %v2063_v34 = vpop.f32.mrb[14].mxu0 }
 0xadc   : > { %v2064_v62 = vpop.f32.mrb[15].mxu0 }
 0xadd   : > { %v1754_v63 = vpack.c.bf16 %v2062_v60, %v2062_v60 }
 0xadf   : > { %v1759_v0 = vsel %vm1757_vm3, %v1754_v63, %v1758_v61 }
 0xae0   : > { %1760 = vst [vmem:[#allocation4] sm:$0x1] %v1759_v0 }
 0xae1 PF: > { %s24_s11 = sadd.s32 1, %s2534_s11  }
 0xae2   : > { %p21_p7 = scmp.ge.s32.totalorder %s24_s11, 6  }
 0xae4   :  { %23 = sbr.rel (!%p21_p7) target bundleno = 5 (0x5), region = 108 }
 0xaeb   :  { %1783 = vsyncpa [#allocation8], 1 }
 0xaec   :  { %1785 = vsyncpa [#allocation8 + $0x1], 1 }
 0xaed   :  { %1786 = vsyncpa [#allocation10], 1 }
 0xaee   :  { %1787 = vsyncpa [#allocation13], 1 }

</bundles_post_ra>
